<compile_context>
chip_gen: v7x
topology: tpu7x:2x2x1
jax: 0.10.0
libtpu: 0.0.40
codegen_flags: <defaults>
</compile_context>

<pallas_src>
import jax
import jax.numpy as jnp
from jax.experimental import pallas as pl
from jax.experimental.pallas import tpu as pltpu


_VMEM_LIMIT = 32 * 1024 * 1024  # above v5e's 16 MiB scoped default, safe on v7x


def _round_up(x, m):
    return ((x + m - 1) // m) * m


def _cdiv(a, b):
    return -(-a // b)


# ----------------------------------------------------------------------------
# Pass 1: per-lane partial sum / sum-of-squares.
#   acc_ref is a (16, kC) block resident across the "arbitrary" grid axis:
#     rows 0:8   -> per-sublane partial sums
#     rows 8:16  -> per-sublane partial sums of squares
#   Per tile we only do VPU vreg adds; the cross-sublane fold is done once in
#   the wrapper.
# ----------------------------------------------------------------------------
def _stats_kernel(x_ref, acc_ref):
    i = pl.program_id(1)

    @pl.when(i == 0)
    def _():
        acc_ref[...] = jnp.zeros_like(acc_ref)

    x = x_ref[...].astype(jnp.float32)            # (TILE, kC)
    r, c = x.shape
    xr = x.reshape(r // 8, 8, c)                  # vreg-row groups (free reshape)
    acc_ref[0:8, :] += jnp.sum(xr, axis=0)        # pure VPU adds
    acc_ref[8:16, :] += jnp.sum(xr * xr, axis=0)


# ----------------------------------------------------------------------------
# Pass 2: y = x * scale + shift  (scale/shift pre-folded per channel).
# ----------------------------------------------------------------------------
def _norm_kernel(scale_ref, shift_ref, x_ref, o_ref):
    x = x_ref[...].astype(jnp.float32)
    o_ref[...] = (x * scale_ref[...] + shift_ref[...]).astype(o_ref.dtype)


# ----------------------------------------------------------------------------
# Wrapper
# ----------------------------------------------------------------------------
def point_batch_norm(x, gamma, beta, *, eps=1e-5, tile_max=4096, n_split=2):
    """Forward pass of PointBatchNorm (training-mode BatchNorm1d).

    x: [B*N, C] or [B*N, L, C]  (channels last); gamma, beta: [C].
    """
    if x.ndim not in (2, 3):
        raise NotImplementedError
    orig_shape = x.shape
    C = orig_shape[-1]
    x2 = x.reshape(-1, C)
    T = x2.shape[0]

    # Lane packing: [T, C] -> [T/k, k*C] with k*C == 128 when C divides 128.
    k = 128 // C if (C < 128 and 128 % C == 0) else 1
    kC = k * C

    # Tile selection (packed rows).  Zero-pad rows: they contribute 0 to both
    # sums and we divide by the true count T, so stats are unaffected; padded
    # outputs are sliced off at the end.
    Tk = _cdiv(T, k)                                   # packed rows needed
    tile = min(tile_max, _round_up(max(Tk, 8), 8))     # multiple of 8 sublanes
    n_per_split = _cdiv(Tk, tile * n_split)
    n_tiles = n_per_split * n_split
    Tp_packed = n_tiles * tile
    Tp = Tp_packed * k

    if Tp != T:
        x2 = jnp.pad(x2, ((0, Tp - T), (0, 0)))
    xp = x2.reshape(Tp_packed, kC)                     # free row-major view

    # --- pass 1: partial sums, sharded across cores on the leading axis ------
    stats = pl.pallas_call(
        _stats_kernel,
        out_shape=jax.ShapeDtypeStruct((n_split, 16, kC), jnp.float32),
        grid=(n_split, n_per_split),
        in_specs=[pl.BlockSpec((tile, kC),
                               lambda c, i: (c * n_per_split + i, 0))],
        out_specs=pl.BlockSpec((None, 16, kC), lambda c, i: (c, 0, 0)),
        compiler_params=pltpu.CompilerParams(
            dimension_semantics=("parallel", "arbitrary"),
            vmem_limit_bytes=_VMEM_LIMIT),
    )(xp)

    # --- tiny JAX: fold partials, compute per-channel scale / shift once -----
    totals = stats.sum(axis=0)                                   # (16, kC)
    sum_c = totals[0:8].sum(axis=0).reshape(k, C).sum(axis=0)    # (C,)
    sq_c = totals[8:16].sum(axis=0).reshape(k, C).sum(axis=0)    # (C,)
    count = jnp.float32(T)
    mean = sum_c / count
    var = jnp.maximum(sq_c / count - mean * mean, 0.0)           # clamp >= 0
    inv = jax.lax.rsqrt(var + jnp.float32(eps))
    scale = gamma.astype(jnp.float32) * inv                      # (C,)
    shift = beta.astype(jnp.float32) - mean * scale              # (C,)
    scale_p = jnp.tile(scale, (k,)).reshape(1, kC)               # packed layout
    shift_p = jnp.tile(shift, (k,)).reshape(1, kC)

    # --- pass 2: normalize + affine (y = x*scale + shift) --------------------
    out = pl.pallas_call(
        _norm_kernel,
        out_shape=jax.ShapeDtypeStruct((Tp_packed, kC), x.dtype),
        grid=(n_tiles,),
        in_specs=[
            pl.BlockSpec((1, kC), lambda i: (0, 0)),     # scale
            pl.BlockSpec((1, kC), lambda i: (0, 0)),     # shift
            pl.BlockSpec((tile, kC), lambda i: (i, 0)),  # x (packed)
        ],
        out_specs=pl.BlockSpec((tile, kC), lambda i: (i, 0)),
        compiler_params=pltpu.CompilerParams(
            dimension_semantics=("parallel",),
            vmem_limit_bytes=_VMEM_LIMIT),
    )(scale_p, shift_p, xp)

    return out.reshape(Tp, C)[:T].reshape(orig_shape)


# Pure-JAX reference (same math as training-mode nn.BatchNorm1d).
def _reference(x, gamma, beta, eps=1e-5):
    C = x.shape[-1]
    x2 = x.reshape(-1, C).astype(jnp.float32)
    mean = x2.mean(axis=0)
    var = ((x2 - mean) ** 2).mean(axis=0)
    y = (x2 - mean) / jnp.sqrt(var + eps) * gamma + beta
    return y.reshape(x.shape).astype(x.dtype)


if __name__ == "__main__":
    key = jax.random.PRNGKey(0)
    key1, key2 = jax.random.split(key)

    embed_channels = 32
    # nn.BatchNorm1d(embed_channels) init: weight=1, bias=0 (deterministic).
    gamma = jnp.ones((embed_channels,), jnp.float32)
    beta = jnp.zeros((embed_channels,), jnp.float32)

    # 3D case: [B*N, L, C]  (B*N = 16, L = 8, C = 32)
    x3 = jax.random.normal(key1, (16, 8, embed_channels), jnp.float32)
    # 2D case: [B*N, C] (non-multiple of the tile / pack factor)
    x2 = jax.random.normal(key2, (130, embed_channels), jnp.float32)

    fwd = jax.jit(point_batch_norm)
    y3 = jax.block_until_ready(fwd(x3, gamma, beta))
    y2 = jax.block_until_ready(fwd(x2, gamma, beta))

    r3 = _reference(x3, gamma, beta)
    r2 = _reference(x2, gamma, beta)
    assert y3.shape == x3.shape and y2.shape == x2.shape
    assert jnp.max(jnp.abs(y3 - r3)) < 1e-4
    assert jnp.max(jnp.abs(y2 - r2)) < 1e-4

    print("KERNEL_OK")
</pallas_src>

<mosaic_0001>
module attributes {stable_mosaic.version = 11 : i64} {
  func.func @_stats_kernel(%arg0: i32, %arg1: i32, %arg2: memref<32x128xf32, #tpu.memory_space<vmem>>, %arg3: memref<1x16x128xf32, #tpu.memory_space<vmem>>) attributes {dimension_semantics = [#tpu.dimension_semantics<parallel>, #tpu.dimension_semantics<arbitrary>], iteration_bounds = array<i64: 2, 1>, scalar_prefetch = 0 : i64, scratch_operands = 0 : i64, tpu.core_type = #tpu.core_type<tc>, window_params = [{transform_indices = @transform_0, window_bounds = array<i64: 32, 128>}, {transform_indices = @transform_1, window_bounds = array<i64: 1, 16, 128>}]} {
    %c0_i32 = arith.constant 0 : i32
    %0 = arith.cmpi eq, %arg1, %c0_i32 : i32
    %1 = arith.extui %0 : i1 to i32
    %c0_i32_0 = arith.constant 0 : i32
    %2 = arith.cmpi ne, %1, %c0_i32_0 : i32
    scf.if %2 {
      %cst_14 = arith.constant 0.000000e+00 : f32
      %20 = vector.broadcast %cst_14 : f32 to vector<16x128xf32>
      %c0_15 = arith.constant 0 : index
      %c0_16 = arith.constant 0 : index
      %c0_17 = arith.constant 0 : index
      %21 = vector.load %arg3[%c0_15, %c0_16, %c0_17] : memref<1x16x128xf32, #tpu.memory_space<vmem>>, vector<1x16x128xf32>
      %22 = vector.shape_cast %21 : vector<1x16x128xf32> to vector<16x128xf32>
      %23 = vector.shape_cast %20 : vector<16x128xf32> to vector<1x16x128xf32>
      tpu.vector_store %arg3[%c0_15, %c0_16, %c0_17], %23 {strides = array<i32>} : memref<1x16x128xf32, #tpu.memory_space<vmem>>, vector<1x16x128xf32>,
    } else {
    }
    %c0 = arith.constant 0 : index
    %c0_1 = arith.constant 0 : index
    %3 = vector.load %arg2[%c0, %c0_1] : memref<32x128xf32, #tpu.memory_space<vmem>>, vector<32x128xf32>
    %4 = vector.shape_cast %3 : vector<32x128xf32> to vector<4x8x128xf32>
    %c0_2 = arith.constant 0 : index
    %c0_3 = arith.constant 0 : index
    %c0_4 = arith.constant 0 : index
    %5 = vector.load %arg3[%c0_2, %c0_3, %c0_4] : memref<1x16x128xf32, #tpu.memory_space<vmem>>, vector<1x8x128xf32>
    %6 = vector.shape_cast %5 : vector<1x8x128xf32> to vector<8x128xf32>
    %cst = arith.constant dense<0.000000e+00> : vector<8x128xf32>
    %7 = vector.multi_reduction <add>, %4, %cst [0] : vector<4x8x128xf32> to vector<8x128xf32>
    %8 = arith.addf %6, %7 : vector<8x128xf32>
    %c0_5 = arith.constant 0 : index
    %c0_6 = arith.constant 0 : index
    %c0_7 = arith.constant 0 : index
    %9 = vector.load %arg3[%c0_5, %c0_6, %c0_7] : memref<1x16x128xf32, #tpu.memory_space<vmem>>, vector<1x8x128xf32>
    %10 = vector.shape_cast %9 : vector<1x8x128xf32> to vector<8x128xf32>
    %11 = vector.shape_cast %8 : vector<8x128xf32> to vector<1x8x128xf32>
    tpu.vector_store %arg3[%c0_5, %c0_6, %c0_7], %11 {strides = array<i32>} : memref<1x16x128xf32, #tpu.memory_space<vmem>>, vector<1x8x128xf32>,
    %c0_8 = arith.constant 0 : index
    %c8 = arith.constant 8 : index
    %c0_9 = arith.constant 0 : index
    %12 = vector.load %arg3[%c0_8, %c8, %c0_9] : memref<1x16x128xf32, #tpu.memory_space<vmem>>, vector<1x8x128xf32>
    %13 = vector.shape_cast %12 : vector<1x8x128xf32> to vector<8x128xf32>
    %14 = arith.mulf %4, %4 : vector<4x8x128xf32>
    %cst_10 = arith.constant dense<0.000000e+00> : vector<8x128xf32>
    %15 = vector.multi_reduction <add>, %14, %cst_10 [0] : vector<4x8x128xf32> to vector<8x128xf32>
    %16 = arith.addf %13, %15 : vector<8x128xf32>
    %c0_11 = arith.constant 0 : index
    %c8_12 = arith.constant 8 : index
    %c0_13 = arith.constant 0 : index
    %17 = vector.load %arg3[%c0_11, %c8_12, %c0_13] : memref<1x16x128xf32, #tpu.memory_space<vmem>>, vector<1x8x128xf32>
    %18 = vector.shape_cast %17 : vector<1x8x128xf32> to vector<8x128xf32>
    %19 = vector.shape_cast %16 : vector<8x128xf32> to vector<1x8x128xf32>
    tpu.vector_store %arg3[%c0_11, %c8_12, %c0_13], %19 {strides = array<i32>} : memref<1x16x128xf32, #tpu.memory_space<vmem>>, vector<1x8x128xf32>,
    return
  }
  func.func @transform_0(%arg0: i32, %arg1: i32) -> (i32, i32) {
    %c1_i32 = arith.constant 1 : i32
    %0 = arith.muli %arg0, %c1_i32 : i32
    %1 = arith.addi %0, %arg1 : i32
    %c0_i32 = arith.constant 0 : i32
    %c0_i32_0 = arith.constant 0 : i32
    return %1, %c0_i32 : i32, i32
  }
  func.func @transform_1(%arg0: i32, %arg1: i32) -> (i32, i32, i32) {
    %c0_i32 = arith.constant 0 : i32
    %c0_i32_0 = arith.constant 0 : i32
    %c0_i32_1 = arith.constant 0 : i32
    return %arg0, %c0_i32, %c0_i32_0 : i32, i32, i32
  }
}

module attributes {stable_mosaic.version = 11 : i64} {
  func.func @_norm_kernel(%arg0: i32, %arg1: memref<1x128xf32, #tpu.memory_space<vmem>>, %arg2: memref<1x128xf32, #tpu.memory_space<vmem>>, %arg3: memref<32x128xf32, #tpu.memory_space<vmem>>, %arg4: memref<32x128xf32, #tpu.memory_space<vmem>>) attributes {dimension_semantics = [#tpu.dimension_semantics<parallel>], iteration_bounds = array<i64: 2>, scalar_prefetch = 0 : i64, scratch_operands = 0 : i64, tpu.core_type = #tpu.core_type<tc>, window_params = [{pipeline_mode = #tpu.pipeline_mode<synchronous>, transform_indices = @transform_0, window_bounds = array<i64: 1, 128>}, {pipeline_mode = #tpu.pipeline_mode<synchronous>, transform_indices = @transform_1, window_bounds = array<i64: 1, 128>}, {transform_indices = @transform_2, window_bounds = array<i64: 32, 128>}, {transform_indices = @transform_3, window_bounds = array<i64: 32, 128>}]} {
    %c0 = arith.constant 0 : index
    %c0_0 = arith.constant 0 : index
    %0 = vector.load %arg3[%c0, %c0_0] : memref<32x128xf32, #tpu.memory_space<vmem>>, vector<32x128xf32>
    %c0_1 = arith.constant 0 : index
    %c0_2 = arith.constant 0 : index
    %1 = vector.load %arg1[%c0_1, %c0_2] : memref<1x128xf32, #tpu.memory_space<vmem>>, vector<1x128xf32>
    %2 = vector.broadcast %1 : vector<1x128xf32> to vector<32x128xf32>
    %3 = arith.mulf %0, %2 : vector<32x128xf32>
    %c0_3 = arith.constant 0 : index
    %c0_4 = arith.constant 0 : index
    %4 = vector.load %arg2[%c0_3, %c0_4] : memref<1x128xf32, #tpu.memory_space<vmem>>, vector<1x128xf32>
    %5 = vector.broadcast %4 : vector<1x128xf32> to vector<32x128xf32>
    %6 = arith.addf %3, %5 : vector<32x128xf32>
    %c0_5 = arith.constant 0 : index
    %c0_6 = arith.constant 0 : index
    %7 = vector.load %arg4[%c0_5, %c0_6] : memref<32x128xf32, #tpu.memory_space<vmem>>, vector<32x128xf32>
    tpu.vector_store %arg4[%c0_5, %c0_6], %6 {strides = array<i32>} : memref<32x128xf32, #tpu.memory_space<vmem>>, vector<32x128xf32>,
    return
  }
  func.func @transform_0(%arg0: i32) -> (i32, i32) {
    %c0_i32 = arith.constant 0 : i32
    %c0_i32_0 = arith.constant 0 : i32
    %c0_i32_1 = arith.constant 0 : i32
    return %c0_i32, %c0_i32_0 : i32, i32
  }
  func.func @transform_1(%arg0: i32) -> (i32, i32) {
    %c0_i32 = arith.constant 0 : i32
    %c0_i32_0 = arith.constant 0 : i32
    %c0_i32_1 = arith.constant 0 : i32
    return %c0_i32, %c0_i32_0 : i32, i32
  }
  func.func @transform_2(%arg0: i32) -> (i32, i32) {
    %c0_i32 = arith.constant 0 : i32
    %c0_i32_0 = arith.constant 0 : i32
    return %arg0, %c0_i32 : i32, i32
  }
  func.func @transform_3(%arg0: i32) -> (i32, i32) {
    %c0_i32 = arith.constant 0 : i32
    %c0_i32_0 = arith.constant 0 : i32
    return %arg0, %c0_i32 : i32, i32
  }
}

</mosaic_0001>

<bundles_post_ra>
// kernel: tile.18
= control target key start
LH: loop header
LB: loop body
LE: loop exit
PB: predicated region body
PF: predicated region fallthrough
CT: control target
= control target key end

     0   :  { %s22_s0 = inlined_call_operand.vmem [shape: f32[32], index: 0, kind: input, shape index: {}]   ;;  %s23_s1 = inlined_call_operand.vmem [shape: f32[4,32], index: 1, kind: output, shape index: {}]  }
   0x1   :  { %v4_v0 = vld [vmem:[%s22_s0] ss:$0 sm:$0xff] }
   0x2   :  { %5 = vst [vmem:[%s23_s1] sm:$0xf] %v4_v0 }

// kernel: tile.19
= control target key start
LH: loop header
LB: loop body
LE: loop exit
PB: predicated region body
PF: predicated region fallthrough
CT: control target
= control target key end

     0   :  { %vm7_vm0 = vcmask 261120   ;;  %s37_s8 = smov 32   ;;  %s38_s9 = smov 64   ;;  %vm13_vm1 = vcmask 1048320   ;;  %vm19_vm2 = vcmask 785920   ;;  %vm25_vm3 = vcmask 523520   ;;  %s55_s0 = inlined_call_operand.vmem [shape: f32[4,32], index: 0, kind: input, shape index: {}]   ;;  %s56_s1 = inlined_call_operand.vmem [shape: f32[1,128], index: 1, kind: output, shape index: {}]  }
   0x1   :  { %v4_v0 = vld [vmem:[%s55_s0] sm:$0xf]  ;;  %s36_s0 = smov 96  }
   0x2   :  { %5 = vst [vmem:[#allocation1] sm:$0xf] %v4_v0 }
   0x9   :  { %v10_v1 = vld [vmem:[#allocation1 + $0x3] sm:$0x1]   ;;  %v22_v2 = vld [vmem:[#allocation1 + $0x1] sm:$0x1]   ;;  %v6_v3 = vld [vmem:[#allocation1] sm:$0x1]  }
   0xa   :  { %11 = vrot.lane.b32.xlu0 %v10_v1, %s36_s0  ;;  %23 = vrot.lane.b32.xlu1 %v22_v2, %s37_s8  ;;  %v16_v4 = vld [vmem:[#allocation1 + $0x2] sm:$0x1]   ;;  %8 = vst.msk [vmem:[#allocation0] sm:$0x1] %vm7_vm0, %v6_v3  }
   0xe   :  { %17 = vrot.lane.b32.xlu0 %v16_v4, %s38_s9 }
  0x7c   :  { %v12_v5 = vpop.permute.xlu0 %11   ;;  %v24_v6 = vpop.permute.xlu1 %23  }
  0x7d   :  { %14 = vst.msk [vmem:[#allocation0] sm:$0x1] %vm13_vm1, %v12_v5  }
  0x80   :  { %v18_v7 = vpop.permute.xlu0 %17  }
  0x81   :  { %20 = vst.msk [vmem:[#allocation0] sm:$0x1] %vm19_vm2, %v18_v7  }
  0x82   :  { %26 = vst.msk [vmem:[#allocation0] sm:$0x1] %vm25_vm3, %v24_v6  }
  0x89   :  { %v30_v8 = vld [vmem:[#allocation0] sm:$0x1] }
  0x8a   :  { %32 = vst [vmem:[%s56_s1] sm:$0x1] %v30_v8 }

// kernel: point_batch_norm.2
= control target key start
LH: loop header
LB: loop body
LE: loop exit
PB: predicated region body
PF: predicated region fallthrough
CT: control target
= control target key end

     0   :  { %s298_s6 = smov 0   ;;  %s300_s7 = smov 0   ;;  %s331_s0 = inlined_call_operand.vmem [shape: f32[64,128], index: 0, kind: input, shape index: {}]   ;;  %s332_s1 = inlined_call_operand.vmem [shape: f32[2,16,128], index: 1, kind: output, shape index: {}]  }
   0x1   :  { %s302_s8 = smov 0  }
   0x2 LB: > { %s23_s9 = sadd.s32 1, %s282_s7  ;;  %p231_p0 = scmp.ge.s32.totalorder %s286_s8, 1  ;;  %s286_s8 = sphi %s302_s8, %s11_s8   ;;  %s282_s7 = sphi %s300_s7, %s334_s7   ;;  %s278_s6 = sphi %s298_s6, %s333_s6  }
   0x3   : > { %p25_p1 = scmp.ge.s32.totalorder %s23_s9, 2  ;;  %p104_p2 = scmp.lt.s32.totalorder %s286_s8, 3 }
   0x5   : > { %s336_s9 = smov (%p25_p1, %s23_s9), 0  ;;  %p105_p3 = pnand %p231_p0, %p104_p2 }
   0x6   : > { %p133_p4 = scmp.lt.s32.totalorder (!%p105_p3), %s278_s6, 1  ;;  %s232_s10 = sshll.u32 (!%p105_p3), %s278_s6, 2 }
   0x7   : > { %108 = sbr.rel (%p105_p3) target bundleno = 27 (0x1b), region = 24  ;;  %p127_p5 = scmp.lt.s32.totalorder (!%p105_p3), %s232_s10, 7 }
   0xe   : > { %s338_s10 = smov (!%p127_p5, %s232_s10), 7  ;;  %s340_s6 = smov (!%p133_p4, %s278_s6), 1 }
   0xf   : > { %s233_s11 = sshll.u32 %s338_s10, 3  ;;  %s238_s15 = sshll.u32 %s340_s6, 4 }
  0x10   : > { %s130_s14 = scalar_lea.vmem %s331_s0, %s233_s11  ;;  %s137_s18 = scalar_lea.vmem %s332_s1, %s238_s15 }
  0x11   : > { %v144_v0 = vld [vmem:[%s130_s14] sm:$0xff]  ;;  %v145_v1 = vld [vmem:[%s130_s14 + $0x8] sm:$0xff]  ;;  %v146_v2 = vld [vmem:[%s130_s14 + $0x10] sm:$0xff] }
  0x12   : > { %v147_v3 = vld [vmem:[%s130_s14 + $0x18] sm:$0xff]  ;;  %v149_v4 = vadd.f32 %v145_v1, %v144_v0  ;;  %v155_v5 = vmul.f32 %v144_v0, %v144_v0  ;;  %v156_v6 = vmul.f32 %v145_v1, %v145_v1  ;;  %v157_v7 = vmul.f32 %v146_v2, %v146_v2 }
  0x13   : > { %v158_v9 = vmul.f32 %v147_v3, %v147_v3 }
  0x14   : > { %v150_v8 = vadd.f32 %v149_v4, %v146_v2  ;;  %v159_v10 = vadd.f32 %v156_v6, %v155_v5 }
  0x16   : > { %v151_v11 = vadd.f32 %v150_v8, %v147_v3  ;;  %v160_v12 = vadd.f32 %v159_v10, %v157_v7 }
  0x18   : > { %v161_v13 = vadd.f32 %v160_v12, %v158_v9  ;;  %153 = vst [vmem:[%s137_s18] sm:$0xff] %v151_v11 }
  0x1a   : > { %163 = vst [vmem:[%s137_s18 + $0x8] sm:$0xff] %v161_v13 }
  0x1b PF: > { %s11_s8 = sadd.s32 1, %s286_s8   ;;  %s333_s6 = smov %s282_s7 }
  0x1c   : > { %p8_p6 = scmp.ge.s32.totalorder %s11_s8, 4   ;;  %s334_s7 = smov %s336_s9 }
  0x1e   :  { %10 = sbr.rel (!%p8_p6) target bundleno = 2 (0x2), region = 58 }

// kernel: point_batch_norm.3
= control target key start
LH: loop header
LB: loop body
LE: loop exit
PB: predicated region body
PF: predicated region fallthrough
CT: control target
= control target key end

     0   :  { %s309_s12 = smov 0   ;;  %s332_s0 = inlined_call_operand.vmem [shape: f32[1,128], index: 0, kind: input, shape index: {}]   ;;  %s333_s1 = inlined_call_operand.vmem [shape: f32[1,128], index: 1, kind: input, shape index: {}]   ;;  %s334_s2 = inlined_call_operand.vmem [shape: f32[64,128], index: 2, kind: input, shape index: {}]   ;;  %s335_s3 = inlined_call_operand.vmem [shape: f32[64,128], index: 3, kind: output, shape index: {}]  }
   0x1 LB: > { %s260_s13 = sadd.s32 4294967295, %s287_s12   ;;  %p264_p0 = scmp.ge.s32.totalorder %s287_s12, 1  ;;  %s287_s12 = sphi %s309_s12, %s13_s12  }
   0x2   : > { %p138_p1 = scmp.lt.s32.totalorder %s287_s12, 3 }
   0x4   : > { %p139_p2 = pnand %p264_p0, %p138_p1 }
   0x5   : > { %s265_s14 = sshll.u32 (!%p139_p2), %s260_s13, 2  ;;  %v269_v0 = vld [vmem:[%s332_s0] ss:$0 sm:$0xff] (!%p139_p2) }
   0x6   : > { %142 = sbr.rel (%p139_p2) target bundleno = 23 (0x17), region = 32  ;;  %p163_p3 = scmp.lt.s32.totalorder (!%p139_p2), %s265_s14, 7  ;;  %v270_v1 = vld [vmem:[%s333_s1] ss:$0 sm:$0xff] (!%p139_p2) }
   0xd   : > { %s337_s14 = smov (!%p163_p3, %s265_s14), 7 }
   0xe   : > { %s266_s15 = sshll.u32 %s337_s14, 3 }
   0xf   : > { %s166_s20 = scalar_lea.vmem %s334_s2, %s266_s15  ;;  %s172_s25 = scalar_lea.vmem %s335_s3, %s266_s15 }
  0x10   : > { %v174_v2 = vld [vmem:[%s166_s20] sm:$0xff]  ;;  %v175_v3 = vld [vmem:[%s166_s20 + $0x8] sm:$0xff]  ;;  %v176_v4 = vld [vmem:[%s166_s20 + $0x10] sm:$0xff] }
  0x11   : > { %v185_v5 = vmul.f32 %v269_v0, %v174_v2  ;;  %v186_v6 = vmul.f32 %v269_v0, %v175_v3  ;;  %v187_v7 = vmul.f32 %v269_v0, %v176_v4  ;;  %v177_v8 = vld [vmem:[%s166_s20 + $0x18] sm:$0xff] }
  0x12   : > { %v188_v9 = vmul.f32 %v269_v0, %v177_v8 }
  0x13   : > { %v196_v10 = vadd.f32 %v270_v1, %v185_v5  ;;  %v197_v11 = vadd.f32 %v270_v1, %v186_v6  ;;  %v198_v12 = vadd.f32 %v270_v1, %v187_v7 }
  0x14   : > { %v199_v13 = vadd.f32 %v270_v1, %v188_v9 }
  0x15   : > { %200 = vst [vmem:[%s172_s25] sm:$0xff] %v196_v10  ;;  %201 = vst [vmem:[%s172_s25 + $0x8] sm:$0xff] %v197_v11 }
  0x16   : > { %202 = vst [vmem:[%s172_s25 + $0x10] sm:$0xff] %v198_v12  ;;  %203 = vst [vmem:[%s172_s25 + $0x18] sm:$0xff] %v199_v13 }
  0x17 PF: > { %s13_s12 = sadd.s32 1, %s287_s12  }
  0x18   : > { %p10_p4 = scmp.ge.s32.totalorder %s13_s12, 4  }
  0x1a   :  { %12 = sbr.rel (!%p10_p4) target bundleno = 1 (0x1), region = 62 }

</bundles_post_ra>
